<compile_context>
chip_gen: v5e
topology: v5e:2x2
jax: 0.10.0
libtpu: 0.0.40
codegen_flags: <defaults>
</compile_context>

<pallas_src>
import functools

import jax
import jax.numpy as jnp
import numpy as np
from jax.experimental import pallas as pl
from jax.experimental.pallas import tpu as pltpu

_LANES = 128
_BOXES_PER_ROW = _LANES // 4      # 32 boxes per 128-lane row (4 coords each)
_SPLIT_MIN_ROWS = 128             # >= 4096 boxes: worth >=2 grid steps (v7x 2 TCs)


# --------------------------------------------------------------------------
# pltpu.roll direction probe (cached): find the shift that maps lane l+1 -> l.
# --------------------------------------------------------------------------
def _roll_probe_kernel(x_ref, o_ref):
    o_ref[...] = pltpu.roll(x_ref[...], 1, axis=1)


@functools.cache
def _roll_shift_for_next_lane() -> int:
    """Shift s such that pltpu.roll(x, s, axis=-1)[..., l] == x[..., l + 1]."""
    x = jax.lax.broadcasted_iota(jnp.int32, (8, _LANES), 1)
    out = pl.pallas_call(
        _roll_probe_kernel,
        out_shape=jax.ShapeDtypeStruct((8, _LANES), jnp.int32),
    )(x)
    v = int(out[0, 0])
    if v == _LANES - 1:   # numpy semantics: out[l] = x[(l - shift) % 128]
        return _LANES - 1
    if v == 1:            # out[l] = x[(l + shift) % 128]
        return 1
    raise RuntimeError(f"Unexpected pltpu.roll semantics (probe value {v}).")


# --------------------------------------------------------------------------
# Kernel bodies
# --------------------------------------------------------------------------
def _iou_loss_lanes(p, t, *, loss_type, sh1, sh2):
    """Per-lane IoU loss on interleaved (rows, 128) tiles.

    Lane layout: lane 4k..4k+3 of a row hold (cx, cy, w, h) of one box.
    The returned loss is valid at lanes == 0 (mod 4); other lanes are garbage
    (mixing adjacent boxes) and are masked / sliced away by the caller.
    sh1 / sh2: roll shifts bringing lane l+1 / l+2 to lane l.
    """
    sp = pltpu.roll(p, sh2, axis=1)           # phase0: w_p, phase1: h_p
    st = pltpu.roll(t, sh2, axis=1)
    hp = sp * 0.5
    ht = st * 0.5
    p_lo = p - hp                             # phase0: cx - w/2, phase1: cy - h/2
    p_hi = p + hp
    t_lo = t - ht
    t_hi = t + ht

    tl = jnp.maximum(p_lo, t_lo)
    br = jnp.minimum(p_hi, t_hi)
    d = jnp.maximum(br - tl, 0.0)             # phase0: x-overlap, phase1: y-overlap

    area_i = d * pltpu.roll(d, sh1, axis=1)   # phase0: intersection area
    area_p = sp * pltpu.roll(sp, sh1, axis=1)  # phase0: w_p * h_p
    area_g = st * pltpu.roll(st, sh1, axis=1)
    area_u = area_p + area_g - area_i
    iou = area_i / (area_u + 1e-16)

    if loss_type == "iou":
        return 1.0 - iou * iou

    # giou
    c = jnp.maximum(p_hi, t_hi) - jnp.minimum(p_lo, t_lo)   # cover-box extents
    area_c = c * pltpu.roll(c, sh1, axis=1)
    giou = iou - (area_c - area_u) / jnp.maximum(area_c, 1e-16)
    return 1.0 - jnp.clip(giou, -1.0, 1.0)


def _iou_kernel_none(p_ref, t_ref, o_ref, *, loss_type, sh1, sh2):
    # p_ref/t_ref/o_ref: (tr, 128) tiles.  Output is lane-dense; only lanes
    # == 0 (mod 4) are meaningful (strided pick happens in the wrapper).
    p = p_ref[...].astype(jnp.float32)
    t = t_ref[...].astype(jnp.float32)
    loss = _iou_loss_lanes(p, t, loss_type=loss_type, sh1=sh1, sh2=sh2)
    o_ref[...] = loss.astype(o_ref.dtype)


def _iou_kernel_reduce(p_ref, t_ref, o_ref, *, loss_type, sh1, sh2, n_boxes):
    # Fused reduction: write one (1, 8, 128) partial-sum block per grid step.
    # Mask keeps only lane phase 0 and real (unpadded) boxes.
    p = p_ref[...].astype(jnp.float32)
    t = t_ref[...].astype(jnp.float32)
    loss = _iou_loss_lanes(p, t, loss_type=loss_type, sh1=sh1, sh2=sh2)

    rows = p.shape[0]
    lane = jax.lax.broadcasted_iota(jnp.int32, (rows, _LANES), 1)
    row = jax.lax.broadcasted_iota(jnp.int32, (rows, _LANES), 0)
    box = (pl.program_id(0) * rows + row) * _BOXES_PER_ROW + lane // 4
    valid = ((lane & 3) == 0) & (box < n_boxes)
    masked = jnp.where(valid, loss, 0.0)

    psum = jnp.sum(masked, axis=0, keepdims=True)            # (1, 128)
    o_ref[...] = jnp.broadcast_to(psum[None, :, :], (1, 8, _LANES))


# --------------------------------------------------------------------------
# Host-side wrapper
# --------------------------------------------------------------------------
def _plan_tiles(n_boxes: int, block_rows: int):
    """Pick (num_blocks, rows_per_block, padded_rows) for n_boxes boxes."""
    r = pl.cdiv(n_boxes, _BOXES_PER_ROW)          # 128-lane rows needed
    nblk = pl.cdiv(r, block_rows)
    # Give v7x's two TensorCores >=2 grid steps for mid-sized inputs, but only
    # when it does not introduce a host-side pad copy that we otherwise avoid.
    if nblk == 1 and r >= _SPLIT_MIN_ROWS and (r % 16 == 0 or n_boxes % _BOXES_PER_ROW != 0):
        nblk = 2
    if nblk > 1:
        tr = ((pl.cdiv(r, nblk) + 7) // 8) * 8    # balanced, sublane-aligned tiles
        nblk = pl.cdiv(r, tr)
    else:
        tr = r                                    # single block: full (ragged) extent
    return nblk, tr, nblk * tr


def _as_rows(x, r_pad):
    """(n, 4) -> (r_pad, 128) lane-row view.  Metadata-only when no pad needed."""
    flat = x.reshape(-1)
    need = r_pad * _LANES
    if flat.shape[0] != need:
        flat = jnp.pad(flat, (0, need - flat.shape[0]))   # ragged tail only
    return flat.reshape(r_pad, _LANES)


def iou_loss(pred, target, *, loss_type: str = "iou", reduction: str = "none",
             block_rows: int = 2048):
    """JAX/Pallas equivalent of IOUloss.forward(pred, target)."""
    assert loss_type in ("iou", "giou")
    assert reduction in ("mean", "sum", "none")
    assert pred.shape[0] == target.shape[0]

    pred = pred.reshape(-1, 4)
    target = target.reshape(-1, 4)
    n = pred.shape[0]

    if n == 0:
        empty = jnp.zeros((0,), jnp.float32)
        if reduction == "mean":
            return jnp.mean(empty)
        if reduction == "sum":
            return jnp.sum(empty)
        return empty.astype(pred.dtype)

    nblk, tr, r_pad = _plan_tiles(n, block_rows)
    p_rows = _as_rows(pred, r_pad)
    t_rows = _as_rows(target, r_pad)

    sh1 = _roll_shift_for_next_lane()
    sh2 = (2 * sh1) % _LANES

    in_specs = [
        pl.BlockSpec((tr, _LANES), lambda i: (i, 0)),
        pl.BlockSpec((tr, _LANES), lambda i: (i, 0)),
    ]
    compiler_params = pltpu.CompilerParams(dimension_semantics=("parallel",))
    flops = 40 * r_pad * _LANES                    # elementwise-only estimate
    in_bytes = 2 * r_pad * _LANES * 4

    if reduction == "none":
        kernel = functools.partial(_iou_kernel_none,
                                   loss_type=loss_type, sh1=sh1, sh2=sh2)
        out = pl.pallas_call(
            kernel,
            out_shape=jax.ShapeDtypeStruct((r_pad, _LANES), pred.dtype),
            grid_spec=pltpu.PrefetchScalarGridSpec(
                num_scalar_prefetch=0,
                grid=(nblk,),
                in_specs=in_specs,
                out_specs=pl.BlockSpec((tr, _LANES), lambda i: (i, 0)),
            ),
            compiler_params=compiler_params,
            cost_estimate=pl.CostEstimate(flops=flops, transcendentals=0,
                                          bytes_accessed=in_bytes + r_pad * _LANES * 4),
        )(p_rows, t_rows)
        # Valid per-box loss lives at lane phase 0 of each 4-lane quad, i.e. at
        # flat index 4 * box.  A cheap strided pick recovers the dense (n,) loss.
        return out.reshape(-1, 4)[:n, 0]

    # reduction == "mean" / "sum": fused per-block partial sums, tiny final sum.
    kernel = functools.partial(_iou_kernel_reduce, loss_type=loss_type,
                               sh1=sh1, sh2=sh2, n_boxes=n)
    partials = pl.pallas_call(
        kernel,
        out_shape=jax.ShapeDtypeStruct((nblk, 8, _LANES), jnp.float32),
        grid_spec=pltpu.PrefetchScalarGridSpec(
            num_scalar_prefetch=0,
            grid=(nblk,),
            in_specs=in_specs,
            out_specs=pl.BlockSpec((1, 8, _LANES), lambda i: (i, 0, 0)),
        ),
        compiler_params=compiler_params,
        cost_estimate=pl.CostEstimate(flops=flops, transcendentals=0,
                                      bytes_accessed=in_bytes + nblk * 8 * _LANES * 4),
    )(p_rows, t_rows)
    total = jnp.sum(partials[:, 0, :])
    if reduction == "mean":
        return total / n
    return total


# --------------------------------------------------------------------------
# Pure-JAX reference (mirrors the PyTorch module)
# --------------------------------------------------------------------------
def _iou_loss_ref(pred, target, *, loss_type="iou", reduction="none"):
    pred = pred.reshape(-1, 4)
    target = target.reshape(-1, 4)
    tl = jnp.maximum(pred[:, :2] - pred[:, 2:] / 2, target[:, :2] - target[:, 2:] / 2)
    br = jnp.minimum(pred[:, :2] + pred[:, 2:] / 2, target[:, :2] + target[:, 2:] / 2)
    area_p = jnp.prod(pred[:, 2:], axis=1)
    area_g = jnp.prod(target[:, 2:], axis=1)
    en = jnp.prod((tl < br).astype(tl.dtype), axis=1)
    area_i = jnp.prod(br - tl, axis=1) * en
    area_u = area_p + area_g - area_i
    iou = area_i / (area_u + 1e-16)
    if loss_type == "iou":
        loss = 1 - iou ** 2
    else:
        c_tl = jnp.minimum(pred[:, :2] - pred[:, 2:] / 2, target[:, :2] - target[:, 2:] / 2)
        c_br = jnp.maximum(pred[:, :2] + pred[:, 2:] / 2, target[:, :2] + target[:, 2:] / 2)
        area_c = jnp.prod(c_br - c_tl, axis=1)
        giou = iou - (area_c - area_u) / jnp.maximum(area_c, 1e-16)
        loss = 1 - jnp.clip(giou, -1.0, 1.0)
    if reduction == "mean":
        loss = loss.mean()
    elif reduction == "sum":
        loss = loss.sum()
    return loss


if __name__ == "__main__":
    key = jax.random.PRNGKey(0)
    # n=200 exercises the ragged-tail (padded, single-block) path.
    # n=8192 exercises the zero-copy metadata reshape + 2-block "parallel" path.
    for n in (200, 8192):
        kc, ks, kc2, ks2, key = jax.random.split(key, 5)
        pred = jnp.concatenate(
            [jax.random.uniform(kc, (n, 2), jnp.float32, 0.0, 10.0),
             jax.random.uniform(ks, (n, 2), jnp.float32, 0.5, 4.0)], axis=1)
        target = jnp.concatenate(
            [jax.random.uniform(kc2, (n, 2), jnp.float32, 0.0, 10.0),
             jax.random.uniform(ks2, (n, 2), jnp.float32, 0.5, 4.0)], axis=1)

        for loss_type in ("iou", "giou"):
            for reduction in ("none", "mean", "sum"):
                out = jax.block_until_ready(
                    iou_loss(pred, target, loss_type=loss_type, reduction=reduction))
                ref = _iou_loss_ref(pred, target, loss_type=loss_type, reduction=reduction)
                np.testing.assert_allclose(np.asarray(out), np.asarray(ref),
                                           rtol=1e-5, atol=1e-4)

    print("KERNEL_OK")
</pallas_src>

<mosaic_0001>
module attributes {stable_mosaic.version = 11 : i64} {
  func.func @_roll_probe_kernel(%arg0: memref<8x128xi32, #tpu.memory_space<vmem>>, %arg1: memref<8x128xi32, #tpu.memory_space<vmem>>) attributes {dimension_semantics = [], scalar_prefetch = 0 : i64, scratch_operands = 0 : i64, tpu.core_type = #tpu.core_type<tc>} {
    %c0 = arith.constant 0 : index
    %c0_0 = arith.constant 0 : index
    %0 = vector.load %arg0[%c0, %c0_0] : memref<8x128xi32, #tpu.memory_space<vmem>>, vector<8x128xi32>
    %c1_i32 = arith.constant 1 : i32
    %1 = tpu.dynamic_rotate %0 by %c1_i32 dim 1 : vector<8x128xi32>, i32 -> vector<8x128xi32>
    %c0_1 = arith.constant 0 : index
    %c0_2 = arith.constant 0 : index
    %2 = vector.load %arg1[%c0_1, %c0_2] : memref<8x128xi32, #tpu.memory_space<vmem>>, vector<8x128xi32>
    tpu.vector_store %arg1[%c0_1, %c0_2], %1 {strides = array<i32>} : memref<8x128xi32, #tpu.memory_space<vmem>>, vector<8x128xi32>,
    return
  }
}

</mosaic_0001>

<bundles_post_ra>
// kernel: tpu_custom_call.1
= control target key start
LH: loop header
LB: loop body
LE: loop exit
PB: predicated region body
PF: predicated region fallthrough
CT: control target
= control target key end

     0   :  { %6 = vsyncpa [#allocation3], 0  ;;  %s118_s0 = inlined_call_operand.hbm [shape: s32[8,128], index: 0, kind: input, shape index: {}]   ;;  %s119_s1 = inlined_call_operand.hbm [shape: s32[8,128], index: 1, kind: output, shape index: {}]  }
   0x1   :  { %7 = vsyncpa [#allocation4], 0  ;;  %s13_s8 = sshll.u32 %s118_s0, 4  ;;  %s99_s9 = smov [#allocation2]   ;;  %s14_s8 = int_to_ptr.hbm [resolvable:$true] %s13_s8 }
   0x2   :  { %s15_s10 = sshll.u32 %s99_s9, 4  ;;  %s16_s10 = int_to_ptr.vmem [resolvable:$true] %s15_s10 }
   0x3   :  { %18 = dma.hbm_to_vmem [thread:$0]  %s14_s8, 128, %s16_s10, [#allocation3]  }
   0x4   :  { %95 = dma.done.wait [#allocation3], 128  }
   0x5   :  { %96 = vsyncadd [#allocation3], 4294967168  ;;  %v23_v0 = vld [vmem:[#allocation2] sm:$0xff]  ;;  %s100_s11 = smov 1   ;;  %s101_s12 = smov [#allocation5]  }
   0x6   :  { %24 = vrot.lane.b32.xlu0 %v23_v0, %s100_s11  ;;  %s32_s13 = sshll.u32 %s101_s12, 4  ;;  %s34_s16 = sshll.u32 %s119_s1, 4  ;;  %s33_s13 = int_to_ptr.vmem [resolvable:$true] %s32_s13  ;;  %s35_s16 = int_to_ptr.hbm [resolvable:$true] %s34_s16 }
  0x78   :  { %v25_v1 = vpop.permute.xlu0 %24 }
  0x79   :  { %26 = vst [vmem:[#allocation5] sm:$0xff] %v25_v1 }
  0x7a   :  { %37 = dma.vmem_to_hbm [thread:$0]  %s33_s13, 128, %s35_s16, [#allocation4]  }
  0x7b   :  { %97 = dma.done.wait [#allocation4], 128  }
  0x7c   :  { %98 = vsyncadd [#allocation4], 4294967168 }
  0x7d   :  { %42 = vsyncpa [#allocation3], 1 }
  0x7e   :  { %43 = vsyncpa [#allocation4], 1 }

</bundles_post_ra>
